<compile_context>
chip_gen: v7x
topology: tpu7x:2x2x1
jax: 0.10.0
libtpu: 0.0.40
codegen_flags: <defaults>
</compile_context>

<pallas_src>
import functools

import jax
import jax.numpy as jnp
from jax import lax
from jax.experimental import pallas as pl
from jax.experimental.pallas import tpu as pltpu


def flash_attention_kernel(xq_ref, xkv_ref, wq_ref, bq_ref, wkv_ref, bkv_ref,
                           o_ref, q_sc, m_sc, l_sc, acc_sc):
    # xq_ref:  (1, TQ, H)   rows of x for this query tile
    # xkv_ref: (1, TK, H)   rows of x for this key/value tile
    # wq_ref:  (H, H)   bq_ref: (1, H)
    # wkv_ref: (H, 2H)  bkv_ref: (1, 2H)   (K and V projections fused)
    # o_ref:   (1, TQ, H)
    H = wq_ref.shape[0]
    ki = pl.program_id(2)

    @pl.when(ki == 0)
    def _init():
        # Project the Q tile once per (batch, q-tile) and keep it resident.
        q_sc[...] = (
            jnp.dot(xq_ref[0], wq_ref[...], preferred_element_type=jnp.float32)
            + bq_ref[...]
        )
        m_sc[...] = jnp.full(m_sc.shape, -jnp.inf, dtype=jnp.float32)
        l_sc[...] = jnp.zeros(l_sc.shape, dtype=jnp.float32)
        acc_sc[...] = jnp.zeros(acc_sc.shape, dtype=jnp.float32)

    # Fused K|V projection for this key tile: one MXU pass, H -> 2H.
    kv = (
        jnp.dot(xkv_ref[0], wkv_ref[...], preferred_element_type=jnp.float32)
        + bkv_ref[...]
    )
    k = kv[:, :H]
    v = kv[:, H:]

    # scores = q @ k^T with contraction on the last dims (no explicit transpose).
    s = lax.dot_general(
        q_sc[...], k,
        dimension_numbers=(((1,), (1,)), ((), ())),
        preferred_element_type=jnp.float32,
    )  # (TQ, TK)

    # Online softmax update.
    m_prev = m_sc[...]
    m_new = jnp.maximum(m_prev, jnp.max(s, axis=-1, keepdims=True))
    alpha = jnp.exp(m_prev - m_new)
    p = jnp.exp(s - m_new)
    l_sc[...] = alpha * l_sc[...] + jnp.sum(p, axis=-1, keepdims=True)
    acc_sc[...] = alpha * acc_sc[...] + jnp.dot(
        p, v, preferred_element_type=jnp.float32)
    m_sc[...] = m_new

    @pl.when(ki == pl.num_programs(2) - 1)
    def _finalize():
        # Normalize the (TQ, H) accumulator once, after the PV matmuls
        # (S*H multiplies instead of S*S); reciprocal runs on the idle EUP slot.
        inv_l = pl.reciprocal(l_sc[...], approx=True)
        o_ref[0] = (acc_sc[...] * inv_l).astype(o_ref.dtype)


def _pick_tile(s, target):
    """Largest aligned tile: `target` if S is 128-aligned, else the full S."""
    if s % 128 == 0:
        return min(s, target)
    return s


@jax.jit
def attention_forward(x, wq, bq, wk, bk, wv, bv):
    """x: (B, S, H); w*: PyTorch-layout (out, in) weights; b*: (H,)."""
    B, S, H = x.shape

    TQ = _pick_tile(S, 256)   # query tile
    TK = _pick_tile(S, 512)   # key/value tile (flash reduction axis)
    n_q = S // TQ
    n_k = S // TK

    # Pre-transpose to (in, out); fuse K|V weights/biases so each key tile needs
    # a single MXU pass. (Done under the same jit so XLA hoists/fuses these.)
    wq_t = wq.T                                             # (H, H)
    wkv_t = jnp.concatenate([wk.T, wv.T], axis=1)           # (H, 2H)
    bq2 = bq.reshape(1, H)
    bkv2 = jnp.concatenate([bk, bv]).reshape(1, 2 * H)

    w_q_spec = pl.BlockSpec((H, H), lambda b, qi, ki: (0, 0))
    b_q_spec = pl.BlockSpec((1, H), lambda b, qi, ki: (0, 0))
    w_kv_spec = pl.BlockSpec((H, 2 * H), lambda b, qi, ki: (0, 0))
    b_kv_spec = pl.BlockSpec((1, 2 * H), lambda b, qi, ki: (0, 0))
    # TODO(synk): weight/bias blocks are grid-invariant; pl.Buffered(1) on their
    # specs would drop the redundant second pipeline buffer for large H.

    cost = pl.CostEstimate(
        flops=2 * B * (3 * S * H * H + 2 * S * S * H),
        transcendentals=B * S * S,
        bytes_accessed=(3 * B * S * H + 3 * H * H + 3 * H) * x.dtype.itemsize,
    )

    return pl.pallas_call(
        flash_attention_kernel,
        out_shape=jax.ShapeDtypeStruct((B, S, H), x.dtype),
        grid_spec=pltpu.PrefetchScalarGridSpec(
            num_scalar_prefetch=0,
            grid=(B, n_q, n_k),
            in_specs=[
                pl.BlockSpec((1, TQ, H), lambda b, qi, ki: (b, qi, 0)),  # x (q rows)
                pl.BlockSpec((1, TK, H), lambda b, qi, ki: (b, ki, 0)),  # x (kv rows)
                w_q_spec, b_q_spec,
                w_kv_spec, b_kv_spec,
            ],
            out_specs=pl.BlockSpec((1, TQ, H), lambda b, qi, ki: (b, qi, 0)),
            scratch_shapes=[
                pltpu.VMEM((TQ, H), jnp.float32),   # cached projected Q tile
                pltpu.VMEM((TQ, 1), jnp.float32),   # running max m
                pltpu.VMEM((TQ, 1), jnp.float32),   # running denominator l
                pltpu.VMEM((TQ, H), jnp.float32),   # output accumulator
            ],
        ),
        compiler_params=pltpu.CompilerParams(
            dimension_semantics=("parallel", "parallel", "arbitrary"),
            vmem_limit_bytes=48 * 1024 * 1024,
        ),
        cost_estimate=cost,
    )(x, x, wq_t, bq2, wkv_t, bkv2)


def reference_forward(x, wq, bq, wk, bk, wv, bv):
    """Plain-JAX reference replicating the PyTorch forward exactly."""
    q = jnp.einsum("bsh,oh->bso", x, wq) + bq
    k = jnp.einsum("bsh,oh->bso", x, wk) + bk
    v = jnp.einsum("bsh,oh->bso", x, wv) + bv
    scores = jnp.einsum("bqh,bkh->bqk", q, k)
    attn = jax.nn.softmax(scores, axis=2)
    return jnp.einsum("bqk,bkh->bqh", attn, v)


if __name__ == "__main__":
    B, S, H = 2, 8, 32
    key = jax.random.PRNGKey(0)
    kx, kq, kbq, kk, kbk, kv, kbv = jax.random.split(key, 7)

    # Deterministic init mimicking nn.Linear's uniform(-1/sqrt(in), 1/sqrt(in)).
    bound = 1.0 / (H ** 0.5)
    x = jax.random.normal(kx, (B, S, H), dtype=jnp.float32)
    wq = jax.random.uniform(kq, (H, H), minval=-bound, maxval=bound, dtype=jnp.float32)
    bq = jax.random.uniform(kbq, (H,), minval=-bound, maxval=bound, dtype=jnp.float32)
    wk = jax.random.uniform(kk, (H, H), minval=-bound, maxval=bound, dtype=jnp.float32)
    bk = jax.random.uniform(kbk, (H,), minval=-bound, maxval=bound, dtype=jnp.float32)
    wv = jax.random.uniform(kv, (H, H), minval=-bound, maxval=bound, dtype=jnp.float32)
    bv = jax.random.uniform(kbv, (H,), minval=-bound, maxval=bound, dtype=jnp.float32)

    out = attention_forward(x, wq, bq, wk, bk, wv, bv)
    out = jax.block_until_ready(out)
    ref = reference_forward(x, wq, bq, wk, bk, wv, bv)

    assert out.shape == (B, S, H)
    # Tolerance is relaxed vs. 1e-5 only because of the approximate EUP
    # reciprocal used for the final softmax normalization.
    assert jnp.allclose(out, ref, atol=1e-2, rtol=1e-2), "mismatch vs reference"

    print("KERNEL_OK")
</pallas_src>

<mosaic_0001>
module attributes {stable_mosaic.version = 11 : i64} {
  func.func @flash_attention_kernel(%arg0: i32, %arg1: i32, %arg2: i32, %arg3: memref<1x8x32xf32, #tpu.memory_space<vmem>>, %arg4: memref<1x8x32xf32, #tpu.memory_space<vmem>>, %arg5: memref<32x32xf32, #tpu.memory_space<vmem>>, %arg6: memref<1x32xf32, #tpu.memory_space<vmem>>, %arg7: memref<32x64xf32, #tpu.memory_space<vmem>>, %arg8: memref<1x64xf32, #tpu.memory_space<vmem>>, %arg9: memref<1x8x32xf32, #tpu.memory_space<vmem>>, %arg10: memref<8x32xf32, #tpu.memory_space<vmem>>, %arg11: memref<8x1xf32, #tpu.memory_space<vmem>>, %arg12: memref<8x1xf32, #tpu.memory_space<vmem>>, %arg13: memref<8x32xf32, #tpu.memory_space<vmem>>) attributes {dimension_semantics = [#tpu.dimension_semantics<parallel>, #tpu.dimension_semantics<parallel>, #tpu.dimension_semantics<arbitrary>], iteration_bounds = array<i64: 2, 1, 1>, scalar_prefetch = 0 : i64, scratch_operands = 4 : i64, tpu.core_type = #tpu.core_type<tc>, window_params = [{transform_indices = @transform_0, window_bounds = array<i64: 1, 8, 32>}, {transform_indices = @transform_1, window_bounds = array<i64: 1, 8, 32>}, {pipeline_mode = #tpu.pipeline_mode<synchronous>, transform_indices = @transform_2, window_bounds = array<i64: 32, 32>}, {pipeline_mode = #tpu.pipeline_mode<synchronous>, transform_indices = @transform_3, window_bounds = array<i64: 1, 32>}, {pipeline_mode = #tpu.pipeline_mode<synchronous>, transform_indices = @transform_4, window_bounds = array<i64: 32, 64>}, {pipeline_mode = #tpu.pipeline_mode<synchronous>, transform_indices = @transform_5, window_bounds = array<i64: 1, 64>}, {transform_indices = @transform_6, window_bounds = array<i64: 1, 8, 32>}]} {
    %c0_i32 = arith.constant 0 : i32
    %0 = arith.cmpi eq, %arg2, %c0_i32 : i32
    %1 = arith.extui %0 : i1 to i32
    %c0_i32_0 = arith.constant 0 : i32
    %2 = arith.cmpi ne, %1, %c0_i32_0 : i32
    scf.if %2 {
      %c0_27 = arith.constant 0 : index
      %c0_28 = arith.constant 0 : index
      %c0_29 = arith.constant 0 : index
      %39 = vector.load %arg3[%c0_27, %c0_28, %c0_29] : memref<1x8x32xf32, #tpu.memory_space<vmem>>, vector<1x8x32xf32>
      %40 = vector.shape_cast %39 : vector<1x8x32xf32> to vector<8x32xf32>
      %c0_30 = arith.constant 0 : index
      %c0_31 = arith.constant 0 : index
      %41 = vector.load %arg5[%c0_30, %c0_31] : memref<32x32xf32, #tpu.memory_space<vmem>>, vector<32x32xf32>
      %cst_32 = arith.constant dense<0.000000e+00> : vector<8x32xf32>
      %42 = tpu.matmul %40, %41, %cst_32 {dimension_numbers = #tpu.dot_dimension_numbers<[1], [0], [0], [1], [0, 0, 1, 1], [], []>} : vector<8x32xf32>, vector<32x32xf32>, vector<8x32xf32> -> vector<8x32xf32>
      %c0_33 = arith.constant 0 : index
      %c0_34 = arith.constant 0 : index
      %43 = vector.load %arg6[%c0_33, %c0_34] : memref<1x32xf32, #tpu.memory_space<vmem>>, vector<1x32xf32>
      %44 = vector.broadcast %43 : vector<1x32xf32> to vector<8x32xf32>
      %45 = arith.addf %42, %44 : vector<8x32xf32>
      %c0_35 = arith.constant 0 : index
      %c0_36 = arith.constant 0 : index
      %46 = vector.load %arg10[%c0_35, %c0_36] : memref<8x32xf32, #tpu.memory_space<vmem>>, vector<8x32xf32>
      tpu.vector_store %arg10[%c0_35, %c0_36], %45 {strides = array<i32>} : memref<8x32xf32, #tpu.memory_space<vmem>>, vector<8x32xf32>,
      %cst_37 = arith.constant 0xFF800000 : f32
      %47 = vector.broadcast %cst_37 : f32 to vector<8x1xf32>
      %c0_38 = arith.constant 0 : index
      %c0_39 = arith.constant 0 : index
      %48 = vector.load %arg11[%c0_38, %c0_39] : memref<8x1xf32, #tpu.memory_space<vmem>>, vector<8x1xf32>
      tpu.vector_store %arg11[%c0_38, %c0_39], %47 {strides = array<i32>} : memref<8x1xf32, #tpu.memory_space<vmem>>, vector<8x1xf32>,
      %cst_40 = arith.constant 0.000000e+00 : f32
      %49 = vector.broadcast %cst_40 : f32 to vector<8x1xf32>
      %c0_41 = arith.constant 0 : index
      %c0_42 = arith.constant 0 : index
      %50 = vector.load %arg12[%c0_41, %c0_42] : memref<8x1xf32, #tpu.memory_space<vmem>>, vector<8x1xf32>
      tpu.vector_store %arg12[%c0_41, %c0_42], %49 {strides = array<i32>} : memref<8x1xf32, #tpu.memory_space<vmem>>, vector<8x1xf32>,
      %cst_43 = arith.constant 0.000000e+00 : f32
      %51 = vector.broadcast %cst_43 : f32 to vector<8x32xf32>
      %c0_44 = arith.constant 0 : index
      %c0_45 = arith.constant 0 : index
      %52 = vector.load %arg13[%c0_44, %c0_45] : memref<8x32xf32, #tpu.memory_space<vmem>>, vector<8x32xf32>
      tpu.vector_store %arg13[%c0_44, %c0_45], %51 {strides = array<i32>} : memref<8x32xf32, #tpu.memory_space<vmem>>, vector<8x32xf32>,
    } else {
    }
    %c0 = arith.constant 0 : index
    %c0_1 = arith.constant 0 : index
    %c0_2 = arith.constant 0 : index
    %3 = vector.load %arg4[%c0, %c0_1, %c0_2] : memref<1x8x32xf32, #tpu.memory_space<vmem>>, vector<1x8x32xf32>
    %4 = vector.shape_cast %3 : vector<1x8x32xf32> to vector<8x32xf32>
    %c0_3 = arith.constant 0 : index
    %c0_4 = arith.constant 0 : index
    %5 = vector.load %arg7[%c0_3, %c0_4] : memref<32x64xf32, #tpu.memory_space<vmem>>, vector<32x64xf32>
    %cst = arith.constant dense<0.000000e+00> : vector<8x64xf32>
    %6 = tpu.matmul %4, %5, %cst {dimension_numbers = #tpu.dot_dimension_numbers<[1], [0], [0], [1], [0, 0, 1, 1], [], []>} : vector<8x32xf32>, vector<32x64xf32>, vector<8x64xf32> -> vector<8x64xf32>
    %c0_5 = arith.constant 0 : index
    %c0_6 = arith.constant 0 : index
    %7 = vector.load %arg8[%c0_5, %c0_6] : memref<1x64xf32, #tpu.memory_space<vmem>>, vector<1x64xf32>
    %8 = vector.broadcast %7 : vector<1x64xf32> to vector<8x64xf32>
    %9 = arith.addf %6, %8 : vector<8x64xf32>
    %10 = vector.extract_strided_slice %9 {offsets = [0, 0], sizes = [8, 32], strides = [1, 1]} : vector<8x64xf32> to vector<8x32xf32>
    %11 = vector.extract_strided_slice %9 {offsets = [0, 32], sizes = [8, 32], strides = [1, 1]} : vector<8x64xf32> to vector<8x32xf32>
    %c0_7 = arith.constant 0 : index
    %c0_8 = arith.constant 0 : index
    %12 = vector.load %arg10[%c0_7, %c0_8] : memref<8x32xf32, #tpu.memory_space<vmem>>, vector<8x32xf32>
    %cst_9 = arith.constant dense<0.000000e+00> : vector<8x8xf32>
    %13 = tpu.matmul %12, %10, %cst_9 {dimension_numbers = #tpu.dot_dimension_numbers<[1], [1], [0], [0], [0, 0, 1, 0], [], []>} : vector<8x32xf32>, vector<8x32xf32>, vector<8x8xf32> -> vector<8x8xf32>
    %c0_10 = arith.constant 0 : index
    %c0_11 = arith.constant 0 : index
    %14 = vector.load %arg11[%c0_10, %c0_11] : memref<8x1xf32, #tpu.memory_space<vmem>>, vector<8x1xf32>
    %cst_12 = arith.constant dense<0xFF800000> : vector<8xf32>
    %15 = vector.multi_reduction <maximumf>, %13, %cst_12 [1] : vector<8x8xf32> to vector<8xf32>
    %16 = vector.shape_cast %15 : vector<8xf32> to vector<8x1xf32>
    %17 = arith.maximumf %14, %16 : vector<8x1xf32>
    %18 = arith.subf %14, %17 : vector<8x1xf32>
    %19 = math.exp %18 : vector<8x1xf32>
    %20 = vector.broadcast %17 : vector<8x1xf32> to vector<8x8xf32>
    %21 = arith.subf %13, %20 : vector<8x8xf32>
    %22 = math.exp %21 : vector<8x8xf32>
    %c0_13 = arith.constant 0 : index
    %c0_14 = arith.constant 0 : index
    %23 = vector.load %arg12[%c0_13, %c0_14] : memref<8x1xf32, #tpu.memory_space<vmem>>, vector<8x1xf32>
    %24 = arith.mulf %19, %23 : vector<8x1xf32>
    %cst_15 = arith.constant dense<0.000000e+00> : vector<8xf32>
    %25 = vector.multi_reduction <add>, %22, %cst_15 [1] : vector<8x8xf32> to vector<8xf32>
    %26 = vector.shape_cast %25 : vector<8xf32> to vector<8x1xf32>
    %27 = arith.addf %24, %26 : vector<8x1xf32>
    %c0_16 = arith.constant 0 : index
    %c0_17 = arith.constant 0 : index
    %28 = vector.load %arg12[%c0_16, %c0_17] : memref<8x1xf32, #tpu.memory_space<vmem>>, vector<8x1xf32>
    tpu.vector_store %arg12[%c0_16, %c0_17], %27 {strides = array<i32>} : memref<8x1xf32, #tpu.memory_space<vmem>>, vector<8x1xf32>,
    %c0_18 = arith.constant 0 : index
    %c0_19 = arith.constant 0 : index
    %29 = vector.load %arg13[%c0_18, %c0_19] : memref<8x32xf32, #tpu.memory_space<vmem>>, vector<8x32xf32>
    %30 = vector.broadcast %19 : vector<8x1xf32> to vector<8x32xf32>
    %31 = arith.mulf %30, %29 : vector<8x32xf32>
    %cst_20 = arith.constant dense<0.000000e+00> : vector<8x32xf32>
    %32 = tpu.matmul %22, %11, %cst_20 {dimension_numbers = #tpu.dot_dimension_numbers<[1], [0], [0], [1], [0, 0, 1, 1], [], []>} : vector<8x8xf32>, vector<8x32xf32>, vector<8x32xf32> -> vector<8x32xf32>
    %33 = arith.addf %31, %32 : vector<8x32xf32>
    %c0_21 = arith.constant 0 : index
    %c0_22 = arith.constant 0 : index
    %34 = vector.load %arg13[%c0_21, %c0_22] : memref<8x32xf32, #tpu.memory_space<vmem>>, vector<8x32xf32>
    tpu.vector_store %arg13[%c0_21, %c0_22], %33 {strides = array<i32>} : memref<8x32xf32, #tpu.memory_space<vmem>>, vector<8x32xf32>,
    %c0_23 = arith.constant 0 : index
    %c0_24 = arith.constant 0 : index
    %35 = vector.load %arg11[%c0_23, %c0_24] : memref<8x1xf32, #tpu.memory_space<vmem>>, vector<8x1xf32>
    tpu.vector_store %arg11[%c0_23, %c0_24], %17 {strides = array<i32>} : memref<8x1xf32, #tpu.memory_space<vmem>>, vector<8x1xf32>,
    %c0_i32_25 = arith.constant 0 : i32
    %36 = arith.cmpi eq, %arg2, %c0_i32_25 : i32
    %37 = arith.extui %36 : i1 to i32
    %c0_i32_26 = arith.constant 0 : i32
    %38 = arith.cmpi ne, %37, %c0_i32_26 : i32
    scf.if %38 {
      %c0_27 = arith.constant 0 : index
      %c0_28 = arith.constant 0 : index
      %39 = vector.load %arg12[%c0_27, %c0_28] : memref<8x1xf32, #tpu.memory_space<vmem>>, vector<8x1xf32>
      %40 = tpu.reciprocal %39 {approx = true} : vector<8x1xf32> -> vector<8x1xf32>
      %c0_29 = arith.constant 0 : index
      %c0_30 = arith.constant 0 : index
      %41 = vector.load %arg13[%c0_29, %c0_30] : memref<8x32xf32, #tpu.memory_space<vmem>>, vector<8x32xf32>
      %42 = vector.broadcast %40 : vector<8x1xf32> to vector<8x32xf32>
      %43 = arith.mulf %41, %42 : vector<8x32xf32>
      %c0_31 = arith.constant 0 : index
      %c0_32 = arith.constant 0 : index
      %c0_33 = arith.constant 0 : index
      %44 = vector.load %arg9[%c0_31, %c0_32, %c0_33] : memref<1x8x32xf32, #tpu.memory_space<vmem>>, vector<1x8x32xf32>
      %45 = vector.shape_cast %44 : vector<1x8x32xf32> to vector<8x32xf32>
      %46 = vector.shape_cast %43 : vector<8x32xf32> to vector<1x8x32xf32>
      tpu.vector_store %arg9[%c0_31, %c0_32, %c0_33], %46 {strides = array<i32>} : memref<1x8x32xf32, #tpu.memory_space<vmem>>, vector<1x8x32xf32>,
    } else {
    }
    return
  }
  func.func @transform_0(%arg0: i32, %arg1: i32, %arg2: i32) -> (i32, i32, i32) {
    %c0_i32 = arith.constant 0 : i32
    %c0_i32_0 = arith.constant 0 : i32
    return %arg0, %arg1, %c0_i32 : i32, i32, i32
  }
  func.func @transform_1(%arg0: i32, %arg1: i32, %arg2: i32) -> (i32, i32, i32) {
    %c0_i32 = arith.constant 0 : i32
    %c0_i32_0 = arith.constant 0 : i32
    return %arg0, %arg2, %c0_i32 : i32, i32, i32
  }
  func.func @transform_2(%arg0: i32, %arg1: i32, %arg2: i32) -> (i32, i32) {
    %c0_i32 = arith.constant 0 : i32
    %c0_i32_0 = arith.constant 0 : i32
    %c0_i32_1 = arith.constant 0 : i32
    return %c0_i32, %c0_i32_0 : i32, i32
  }
  func.func @transform_3(%arg0: i32, %arg1: i32, %arg2: i32) -> (i32, i32) {
    %c0_i32 = arith.constant 0 : i32
    %c0_i32_0 = arith.constant 0 : i32
    %c0_i32_1 = arith.constant 0 : i32
    return %c0_i32, %c0_i32_0 : i32, i32
  }
  func.func @transform_4(%arg0: i32, %arg1: i32, %arg2: i32) -> (i32, i32) {
    %c0_i32 = arith.constant 0 : i32
    %c0_i32_0 = arith.constant 0 : i32
    %c0_i32_1 = arith.constant 0 : i32
    return %c0_i32, %c0_i32_0 : i32, i32
  }
  func.func @transform_5(%arg0: i32, %arg1: i32, %arg2: i32) -> (i32, i32) {
    %c0_i32 = arith.constant 0 : i32
    %c0_i32_0 = arith.constant 0 : i32
    %c0_i32_1 = arith.constant 0 : i32
    return %c0_i32, %c0_i32_0 : i32, i32
  }
  func.func @transform_6(%arg0: i32, %arg1: i32, %arg2: i32) -> (i32, i32, i32) {
    %c0_i32 = arith.constant 0 : i32
    %c0_i32_0 = arith.constant 0 : i32
    return %arg0, %arg1, %c0_i32 : i32, i32, i32
  }
}

</mosaic_0001>

<bundles_post_ra>
// kernel: attention_forward.1
= control target key start
LH: loop header
LB: loop body
LE: loop exit
PB: predicated region body
PF: predicated region fallthrough
CT: control target
= control target key end

     0   :  { %11 = vsyncpa [#allocation7], 0  ;;  %s1225_s0 = inlined_call_operand.vmem [shape: f32[2,8,32], index: 0, kind: input, shape index: {}, may-alias: {0,1}]   ;;  %s1226_s1 = inlined_call_operand.vmem [shape: f32[2,8,32], index: 1, kind: input, shape index: {}, may-alias: {0,1}]   ;;  %s1227_s2 = inlined_call_operand.vmem [shape: f32[32,32], index: 2, kind: input, shape index: {}]   ;;  %s1228_s3 = inlined_call_operand.vmem [shape: f32[1,32], index: 3, kind: input, shape index: {}]   ;;  %s1229_s4 = inlined_call_operand.vmem [shape: f32[32,64], index: 4, kind: input, shape index: {}]   ;;  %s1230_s5 = inlined_call_operand.vmem [shape: f32[1,64], index: 5, kind: input, shape index: {}]   ;;  %s1231_s6 = inlined_call_operand.hbm [shape: f32[2,8,32], index: 6, kind: output, shape index: {}]  }
   0x1   :  { %13 = vsyncpa [#allocation7 + $0x1], 0  ;;  %s1061_s21 = smov 0   ;;  %s1063_s22 = smov 0  }
   0x2   :  { %s1065_s23 = smov 0   ;;  %s1067_s24 = smov 0  }
   0x3   :  { %s1069_s25 = smov 0   ;;  %s1071_s26 = smov 0  }
   0x4 LB: > { %s793_s27 = sadd.s32 4294967295, %s1017_s26   ;;  %s794_s28 = sadd.s32 4294967294, %s1017_s26   ;;  %s1017_s26 = sphi %s1071_s26, %s19_s26   ;;  %s1013_s25 = sphi %s1069_s25, %s1238_s25   ;;  %s1009_s24 = sphi %s1067_s24, %s1237_s24   ;;  %s1005_s23 = sphi %s1065_s23, %s1236_s23   ;;  %s1001_s22 = sphi %s1063_s22, %s1235_s22   ;;  %s997_s21 = sphi %s1061_s21, %s1234_s21  }
   0x5   : > { %s38_s29 = sadd.s32 1, %s1013_s25  ;;  %s187_s30 = sadd.s32 1, %s1005_s23 }
   0x6   : > { %p40_p0 = scmp.ge.s32.totalorder %s38_s29, 2  ;;  %p197_p1 = scmp.ne.s32.totalorder %s1005_s23, %s1001_s22 }
   0x7   : > { %p198_p2 = scmp.eq.s32.totalorder %s793_s27, 1  ;;  %p203_p3 = scmp.ne.s32.totalorder %s1001_s22, %s997_s21 }
   0x8   : > { %s1240_s29 = smov (%p40_p0, %s38_s29), 0  ;;  %p204_p5 = scmp.eq.s32.totalorder %s794_s28, 1 }
   0x9   : > { %p1101_p4 = por %p198_p2, %p197_p1  ;;  %s182_s8 = ssub.s32 %s1013_s25, %s1240_s29 }
   0xa   : > { %p797_p6 = scmp.ge.s32.totalorder %s1017_s26, 1  ;;  %p185_p7 = scmp.eq.s32.totalorder %s182_s8, 0 }
   0xb   : > { %p1108_p8 = por %p204_p5, %p203_p3  ;;  %p254_p9 = scmp.lt.s32.totalorder %s1017_s26, 3 }
   0xc   : > { %s1114_s10 = scalar_select %p185_p7, %s1005_s23, %s187_s30  }
   0xd   : > { %p255_p10 = pnand %p797_p6, %p254_p9 }
   0xe   : > { %v312_v0 = vld [vmem:[%s1227_s2] sm:$0xff] (!%p255_p10)  ;;  %v313_v1 = vld [vmem:[%s1227_s2 + $0x8] sm:$0xff] (!%p255_p10)  ;;  %v1019_v3 = vmov (!%p255_p10), 0.0|0.0   ;;  %v314_v6 = vld [vmem:[%s1227_s2 + $0x10] sm:$0xff] (!%p255_p10)  ;;  %p293_p11 = scmp.lt.s32.totalorder (!%p255_p10), %s1009_s24, 1  ;;  %vm323_vm0 = vcmask (!%p255_p10), 261120  }
   0xf   : > { %258 = sbr.rel (%p255_p10) target bundleno = 1057 (0x421), region = 44  ;;  %v403_v2 = vld [vmem:[%s1229_s4] sm:$0xff] (!%p255_p10)  ;;  %858 = vmatprep.subr.bf16.mxu0 (!%p255_p10), %v1019_v3  ;;  %v859_v4 = vpack.c.bf16 (!%p255_p10), %v313_v1, %v312_v0  ;;  %864 = vmatprep.subr.bf16.mxu1 (!%p255_p10), %v1019_v3  ;;  %v404_v5 = vld [vmem:[%s1229_s4 + $0x8] sm:$0xff] (!%p255_p10)  ;;  %v315_v7 = vld [vmem:[%s1227_s2 + $0x18] sm:$0xff] (!%p255_p10)  ;;  %vm1020_vm1 = vmmov (!%p255_p10), 0   ;;  %v1021_v9 = vmov (!%p255_p10), 0.0  }
  0x10   : > { %v865_v8 = vpack.c.bf16 (!%p255_p10), %v404_v5, %v403_v2  ;;  %834 = vmatprep.mubr.msk.f32.mxu0 (!%p255_p10), %vm1020_vm1, %v1021_v9  ;;  %401 = vst.msk [vmem:[#allocation5] sm:$0xff] (!%p255_p10), %vm323_vm0, %v1021_v9  ;;  %v405_v10 = vld [vmem:[%s1229_s4 + $0x10] sm:$0xff] (!%p255_p10)  ;;  %v406_v11 = vld [vmem:[%s1229_s4 + $0x18] sm:$0xff] (!%p255_p10)  ;;  %845 = vmatprep.mubr.msk.f32.mxu1 (!%p255_p10), %vm1020_vm1, %v1021_v9  ;;  %v862_v12 = vpack.c.bf16 (!%p255_p10), %v315_v7, %v314_v6  ;;  %v801_v16 = vld [vmem:[%s1228_s3] ss:$0 sm:$0xff] (!%p255_p10)  ;;  %s1022_s11 = smov (!%p255_p10), 96  }
  0x11   : > { %860 = vmatpush3.bf16.msra.mxu0 (!%p255_p10), %v859_v4  ;;  %v868_v13 = vpack.c.bf16 (!%p255_p10), %v406_v11, %v405_v10  ;;  %v803_v17 = vld [vmem:[%s1230_s5] ss:$0 sm:$0xff] (!%p255_p10)  ;;  %vm398_vm2 = vcmask (!%p255_p10), 7168   ;;  %v1023_v25 = vmov (!%p255_p10), -inf   ;;  %vm566_vm3 = vcmask (!%p255_p10), 64512   ;;  %s290_s12 = sand.u32 (!%p255_p10), 1, %s1001_s22  }
  0x12   : > { %861 = vmatprep.subr.bf16.mxu0 (!%p255_p10), %v1019_v3  ;;  %866 = vmatpush3.bf16.msra.mxu1 (!%p255_p10), %v865_v8  ;;  %399 = vst.msk [vmem:[#allocation3] sm:$0xff] (!%p255_p10), %vm398_vm2, %v1023_v25  ;;  %400 = vst.msk [vmem:[#allocation4] sm:$0xff] (!%p255_p10), %vm398_vm2, %v1021_v9  ;;  %v1024_v30 = vmov (!%p255_p10), 0  }
  0x13   : > { %867 = vmatprep.subr.bf16.mxu1 (!%p255_p10), %v1019_v3  ;;  %931 = vset.pattern.permute.xlu0 (!%p255_p10), %v1024_v30 }
  0x14   : > { %932 = vset.pattern.permute.xlu1 (!%p255_p10), %v1024_v30 }
  0x15   : > { %863 = vmatpush3.bf16.msra.mxu0 (!%p255_p10), %v862_v12 }
  0x16   : > { %s294_s13 = scalar_select %p293_p11, %s1009_s24, 1  ;;  %869 = vmatpush3.bf16.msra.mxu1 %v868_v13  ;;  %848 = vmatprep.subr.mxu0 %v1021_v9 }
  0x17   : > { %853 = vmatprep.subr.mxu1 %v1021_v9  ;;  %v590_v48 = vld [vmem:[#allocation5] sm:$0xff] }
  0x18   : > { %s799_s14 = sshll.u32 %s294_s13, 3  ;;  %s798_s13 = sshll.u32 %s290_s12, 3 }
  0x19   : > { %s299_s17 = scalar_lea.vmem %s1225_s0, %s799_s14  ;;  %s306_s20 = scalar_lea.vmem %s1226_s1, %s799_s14  ;;  %v565_v31 = vld [vmem:[#allocation3] sm:$0xff]  ;;  %v582_v42 = vld [vmem:[#allocation4] sm:$0xff] }
  0x1a   : > { %v311_v14 = vld [vmem:[%s299_s17] sm:$0xff]  ;;  %s809_s14 = sshll.u32 %s1009_s24, 7  ;;  %s292_s15 = scalar_lea.vmem [#allocation6], %s798_s13 }
  0x1b   : > { %v402_v15 = vld [vmem:[%s306_s20] sm:$0xff]  ;;  %835 = vmatmul.mubr.msk.f32.vlgmr.msra.gmra.mrb[0].mxu0 %vm323_vm0, %v311_v14  ;;  %s704_s16 = sshll.u32 %s292_s15, 4  ;;  %s1177_s19 = scalar_lea.hbm %s1231_s6, %s809_s14  ;;  %s1179_s16 = int_to_ptr.vmem [resolvable:$true] %s704_s16 }
  0x1c   : > { %846 = vmatmul.mubr.msk.f32.vlgmr.msra.gmra.mrb[0].mxu1 %vm323_vm0, %v402_v15  ;;  %850 = vmatprep.mubr.msk.f32.mxu0 %vm1020_vm1, %v1021_v9  ;;  %s690_s20 = scalar_lea.sflag [#allocation7], %s290_s12  ;;  %s939_s27 = scalar_lea.vmem %s1179_s16, 128 }
  0x1d   : > { %855 = vmatprep.mubr.msk.f32.mxu1 %vm1020_vm1, %v1021_v9  ;;  %p940_p12 = scmp.ne.s32.totalorder %s1179_s16, %s939_s27  ;;  %s1025_s24 = smov [#allocation6]  }
  0x1e   : > { %s943_s28 = sshll.u32 %s1025_s24, 4  ;;  %s944_s28 = int_to_ptr.vmem [resolvable:$false] %s943_s28 }
  0x1f   : > { %p941_p13 = pnand %p940_p12, %p1101_p4  ;;  %s945_s30 = scalar_lea.vmem %s944_s28, 256 }
  0x20   : > { %p946_p1 = scmp.lt.s32.totalorder %s1179_s16, %s944_s28  ;;  %p947_p2 = scmp.lt.s32.totalorder %s945_s30, %s939_s27 }
  0x21   : > { %p942_p0 = pneg %p941_p13 }
  0x22   : > { %p948_p3 = por %p947_p2, %p946_p1 }
  0x24   : > { %p949_p5 = pnand %p948_p3, %p942_p0 }
  0xee   : > { %v393_v18 = vpop.f32.mrb[0].mxu0 }
  0xef   : > { %v394_v19 = vadd.f32 %v801_v16, %v393_v18  ;;  %v836_v20 = vpop.f32.mrb[1].mxu0  ;;  %v484_v21 = vpop.f32.mrb[0].mxu1 }
  0xf0   : > { %v485_v22 = vadd.f32 %v803_v17, %v484_v21  ;;  %v847_v23 = vpop.f32.mrb[1].mxu1 }
  0xf1   : > { %397 = vst.msk [vmem:[#allocation2] sm:$0xff] %vm323_vm0, %v394_v19 }
  0xf2   : > { %597 = vrot.lane.b32.xlu1 %v485_v22, %s1022_s11  ;;  %849 = vmatpush3.xpose.msk.msra.mxu0 %vm323_vm0, %v485_v22 }
  0xf8   : > { %v488_v24 = vld [vmem:[#allocation2] sm:$0xff] }
  0xf9   : > { %851 = vmatmul.mubr.msk.f32.vlgmr.msra.gmra.mrb[2].mxu0 %vm323_vm0, %v488_v24 }
 0x164   : > { %v598_v26 = vpop.permute.xlu1 %597 }
 0x165   : > { %854 = vmatpush3.msra.mxu1 %v598_v26 }
 0x1cc   : > { %v561_v27 = vpop.f32.mrb[2].mxu0 }
 0x1cd   : > { %v852_v28 = vpop.f32.mrb[3].mxu0  ;;  %v567_v29 = vsel %vm566_vm3, %v561_v27, -inf }
 0x1ce   : > { %568 = vmax.xlane.f32.xlu0 %v567_v29 }
 0x25b   : > { %v569_v32 = vpop.xlane.xlu0 %568 }
 0x25c   : > { %v570_v33 = vmax.f32 %v565_v31, %v569_v32 }
 0x25e   : > { %v571_v34 = vsub.f32 %v565_v31, %v570_v33  ;;  %675 = vst.msk [vmem:[#allocation3] sm:$0xff] %vm398_vm2, %v570_v33  ;;  %576 = vperm.xlu0 %931, %v570_v33  }
 0x260   : > { %v572_v40 = vmul.f32 1.442695, %v571_v34 }
 0x2dd   : > { %v577_v35 = vpop.permute.xlu0 %576 }
 0x2de   : > { %v579_v36 = vsub.f32 %v561_v27, %v577_v35 }
 0x2e0   : > { %v580_v37 = vmul.f32 1.442695, %v579_v36 }
 0x2e2   : > { %933 = vpow2.f32 %v580_v37 }
 0x2e3   : > { %935 = vpow2.f32 %v572_v40 }
 0x2ec   : > { %v934_v38 = vpop.eup %933 }
 0x2ed   : > { %856 = vmatmul.mubr.msk.f32.vlgmr.msra.gmra.mrb[2].mxu1 %vm566_vm3, %v934_v38  ;;  %v584_v39 = vsel %vm566_vm3, %v934_v38, 0.0  ;;  %v936_v41 = vpop.eup %935 }
 0x2ee   : > { %585 = vadd.xlane.f32.xlu1 %v584_v39  ;;  %v583_v43 = vmul.f32 %v936_v41, %v582_v42 }
 0x2ff   : > { %593 = vperm.xlu1 %932, %v936_v41  }
 0x37b   : > { %v586_v44 = vpop.xlane.xlu1 %585 }
 0x37c   : > { %v587_v45 = vadd.f32 %v586_v44, %v583_v43 }
 0x37e   : > { %589 = vst.msk [vmem:[#allocation4] sm:$0xff] %vm398_vm2, %v587_v45 }
 0x37f   : > { %v594_v49 = vpop.permute.xlu1 %593 }
 0x380   : > { %v596_v50 = vmul.f32 %v594_v49, %v590_v48 }
 0x385   : > { %v679_v46 = vld [vmem:[#allocation4] sm:$0xff] }
 0x386   : > { %937 = vrcp.f32 %v679_v46 }
 0x390   : > { %v938_v47 = vpop.eup %937 }
 0x391   : > { %684 = vperm.xlu0 %931, %v938_v47  }
 0x3c0   : > { %v669_v51 = vpop.f32.mrb[2].mxu1 }
 0x3c1   : > { %v673_v52 = vadd.f32 %v669_v51, %v596_v50  ;;  %v857_v53 = vpop.f32.mrb[3].mxu1 }
 0x3c3   : > { %674 = vst.msk [vmem:[#allocation5] sm:$0xff] %vm323_vm0, %v673_v52 }
 0x3ca   : > { %v681_v54 = vld [vmem:[#allocation5] sm:$0xff] }
 0x410   : > { %v685_v55 = vpop.permute.xlu0 %684 }
 0x411   : > { %v687_v56 = vmul.f32 %v685_v55, %v681_v54 }
 0x413   : > { %688 = vst.msk [vmem:[%s292_s15] sm:$0xff] %vm323_vm0, %v687_v56 }
 0x414   : > { %952 = shalt.err (!%p949_p5)
}
 0x415   : > { %s953_s8 = scalar_lea.hbm %s1177_s19, 128  ;;  %s957_s13 = scalar_lea.hbm %s1231_s6, 256 }
 0x416   : > { %p954_p6 = scmp.ne.s32.totalorder %s1177_s19, %s953_s8  ;;  %p958_p10 = scmp.lt.u32.totalorder %s1177_s19, %s1231_s6 }
 0x417   : > { %p959_p11 = scmp.lt.u32.totalorder %s957_s13, %s953_s8  ;;  %p961_p13 = scmp.lt.u32.totalorder %s953_s8, %s1177_s19 }
 0x418   : > { %p955_p7 = pnand %p954_p6, %p1101_p4 }
 0x419   : > { %p960_p12 = por %p959_p11, %p958_p10 }
 0x41a   : > { %p956_p9 = pneg %p955_p7 }
 0x41b   : > { %p962_p0 = por %p961_p13, %p960_p12 }
 0x41d   : > { %p963_p1 = pnand %p962_p0, %p956_p9 }
 0x41f   : > { %966 = shalt.err (!%p963_p1)
}
 0x420   : > { %870 = dma.vmem_to_hbm [thread:$0]  (%p1101_p4), %s1179_s16, 128, %s1177_s19, %s690_s20  }
 0x421 PF: > { %p876_p2 = scmp.ge.s32.totalorder %s1017_s26, 2  ;;  %s716_s17 = sand.u32 1, %s997_s21  }
 0x422   : > { %s717_s18 = scalar_lea.sflag [#allocation7], %s716_s17 }
 0x423   : > { %p873_p3 = pnand %p876_p2, %p1108_p8 }
 0x425   : > { %992 = dma.done.wait (!%p873_p3), %s717_s18, 128  }
 0x426   : > { %994 = vsyncadd (!%p873_p3), %s717_s18, 4294967168  ;;  %s19_s26 = sadd.s32 1, %s1017_s26   ;;  %s1234_s21 = smov %s1001_s22 }
 0x427   : > { %p16_p5 = scmp.ge.s32.totalorder %s19_s26, 4   ;;  %s1235_s22 = smov %s1005_s23 }
 0x428   : > { %s1236_s23 = smov %s1114_s10  ;;  %s1237_s24 = smov %s1013_s25 }
 0x429   : > { %s1238_s25 = smov %s1240_s29  ;;  %18 = sbr.rel (!%p16_p5) target bundleno = 4 (0x4), region = 90 }
 0x430   :  { %722 = vsyncpa [#allocation7], 1 }
 0x431   :  { %724 = vsyncpa [#allocation7 + $0x1], 1 }

</bundles_post_ra>
